<compile_context>
chip_gen: v5e
topology: v5e:2x2
jax: 0.10.0
libtpu: 0.0.40
codegen_flags: <defaults>
</compile_context>

<pallas_src>
import jax
import jax.numpy as jnp
from jax import lax
from jax.experimental import pallas as pl
from jax.experimental.pallas import tpu as pltpu


def _round_up(x, m):
    return ((x + m - 1) // m) * m


# ---------------------------------------------------------------------------
# Kernel
# ---------------------------------------------------------------------------
def _critic_kernel(sa_ref, w_ref, b_ref, wt_ref, bt_ref, q_ref):
    """One batch tile of the twin-Q forward.

    sa_ref : (TB, in_dim_p)        state||action, zero-padded to a multiple of 8
    w_ref  : (in_dim_p + 2H, 2H)   rows [0:in_dim_p) = W1 || W4
                                   rows [in_dim_p:)  = blockdiag(W2, W5)
    b_ref  : (2, 2H)               row 0 = b1||b4, row 1 = b2||b5
    wt_ref : (2, 2H)               row 0 = [w3, 0], row 1 = [0, w6]
    bt_ref : (2, 1)                [b3; b6]
    q_ref  : (2, TB)               row 0 = q1, row 1 = q2 (lane-dense writeback)
    """
    in_dim_p = sa_ref.shape[1]
    h2 = w_ref.shape[1]
    wdt = w_ref.dtype

    # ---- layer 1: single sublane-aligned K=in_dim_p matmul (concat folded) ----
    z = jnp.dot(sa_ref[...], w_ref[0:in_dim_p, :],
                preferred_element_type=jnp.float32) + b_ref[0:1, :]
    z = jnp.maximum(z, 0.0)

    # ---- layer 2: block-diagonal [2H, 2H] keeps the two heads independent ----
    z = jnp.dot(z.astype(wdt), w_ref[in_dim_p:in_dim_p + h2, :],
                preferred_element_type=jnp.float32) + b_ref[1:2, :]
    z = jnp.maximum(z, 0.0)

    # ---- layer 3: (2, 2H) x (TB, 2H) contracted over 2H -> lane-dense (2, TB) ----
    q = lax.dot_general(wt_ref[...], z.astype(wdt),
                        dimension_numbers=(((1,), (1,)), ((), ())),
                        preferred_element_type=jnp.float32)
    q_ref[...] = (q + bt_ref[...]).astype(q_ref.dtype)


# ---------------------------------------------------------------------------
# Wrapper
# ---------------------------------------------------------------------------
def _choose_batch_tile(B, block_batch):
    """Pick (TB, Bp). Small batches: one tile. Large batches: 128-aligned tiles
    and at least 2 grid steps so the 'parallel' axis can use both v7x cores."""
    b8 = _round_up(B, 8)
    if b8 <= 512:
        return b8, b8
    tb = min(_round_up(block_batch, 128), _round_up(pl.cdiv(b8, 2), 128))
    return tb, _round_up(B, tb)


def critic_forward(state, action, packed, *, block_batch=1024,
                   compute_dtype=jnp.float32):
    """Pallas implementation of Critic.forward -> (q1, q2), each (B, 1) float32."""
    wslab, bslab, wtail, btail = packed
    B, sd = state.shape
    ad = action.shape[1]
    in_dim = sd + ad
    in_dim_p = _round_up(in_dim, 8)
    h2 = wslab.shape[1]
    assert wslab.shape[0] == in_dim_p + h2

    TB, Bp = _choose_batch_tile(B, block_batch)

    # Fold torch.cat into one padded (Bp, in_dim_p) operand so the layer-1 weight
    # slice is sublane-aligned and layer 1 is a single MXU matmul.
    sa = jnp.concatenate([state, action], axis=1)
    sa = jnp.pad(sa, ((0, Bp - B), (0, in_dim_p - in_dim)))
    sa = sa.astype(compute_dtype)
    wslab = wslab.astype(compute_dtype)
    wtail = wtail.astype(compute_dtype)

    grid = (Bp // TB,)
    flops = 2 * Bp * (in_dim_p * h2 + h2 * h2 + h2 * 2)
    bytes_accessed = (sa.size * sa.dtype.itemsize
                      + wslab.size * wslab.dtype.itemsize
                      + wtail.size * wtail.dtype.itemsize
                      + int(bslab.size) * 4 + int(btail.size) * 4
                      + Bp * 2 * 4)

    out = pl.pallas_call(
        _critic_kernel,
        out_shape=jax.ShapeDtypeStruct((2, Bp), jnp.float32),
        grid=grid,
        in_specs=[
            pl.BlockSpec((TB, in_dim_p), lambda i: (i, 0)),
            pl.BlockSpec(wslab.shape, lambda i: (0, 0)),   # VMEM-resident weights
            pl.BlockSpec(bslab.shape, lambda i: (0, 0)),   # VMEM-resident biases
            pl.BlockSpec(wtail.shape, lambda i: (0, 0)),
            pl.BlockSpec(btail.shape, lambda i: (0, 0)),
        ],
        out_specs=pl.BlockSpec((2, TB), lambda i: (0, i)),  # lane-dense output
        compiler_params=pltpu.CompilerParams(
            dimension_semantics=("parallel",)),
        cost_estimate=pl.CostEstimate(
            flops=flops, transcendentals=0, bytes_accessed=bytes_accessed),
    )(sa, wslab, bslab, wtail, btail)

    q1 = out[0, :B][:, None]
    q2 = out[1, :B][:, None]
    return q1, q2


# ---------------------------------------------------------------------------
# Parameter init / packing / pure-JAX reference
# ---------------------------------------------------------------------------
def init_critic_params(key, state_dim, action_dim, hidden_dim):
    """Deterministic init matching PyTorch nn.Linear default ranges.
    Weights stored as [in, out] (pre-transposed), biases as [1, out]."""
    in_dim = state_dim + action_dim
    dims = [(in_dim, hidden_dim), (hidden_dim, hidden_dim), (hidden_dim, 1),
            (in_dim, hidden_dim), (hidden_dim, hidden_dim), (hidden_dim, 1)]
    params = []
    for fan_in, fan_out in dims:
        key, kw, kb = jax.random.split(key, 3)
        bound = 1.0 / (fan_in ** 0.5)
        params.append(jax.random.uniform(kw, (fan_in, fan_out), jnp.float32,
                                         -bound, bound))
        params.append(jax.random.uniform(kb, (1, fan_out), jnp.float32,
                                         -bound, bound))
    return tuple(params)


def pack_critic_params(params, state_dim, action_dim, hidden_dim):
    """Pack the 12 per-layer tensors into fused, sublane-aligned slabs."""
    (w1, b1, w2, b2, w3, b3, w4, b4, w5, b5, w6, b6) = params
    H, H2 = hidden_dim, 2 * hidden_dim
    in_dim = state_dim + action_dim
    in_dim_p = _round_up(in_dim, 8)

    w1f = jnp.zeros((in_dim_p, H2), jnp.float32)
    w1f = w1f.at[:in_dim, :H].set(w1).at[:in_dim, H:].set(w4)   # W1 || W4 (padded)
    w2f = jnp.zeros((H2, H2), jnp.float32)
    w2f = w2f.at[:H, :H].set(w2).at[H:, H:].set(w5)             # block-diagonal
    wslab = jnp.concatenate([w1f, w2f], axis=0)                 # (in_dim_p + 2H, 2H)

    bslab = jnp.concatenate([jnp.concatenate([b1, b4], axis=1),
                             jnp.concatenate([b2, b5], axis=1)], axis=0)  # (2, 2H)

    wtail = jnp.zeros((2, H2), jnp.float32)
    wtail = wtail.at[0, :H].set(w3[:, 0]).at[1, H:].set(w6[:, 0])          # (2, 2H)
    btail = jnp.concatenate([b3, b6], axis=0)                              # (2, 1)

    return wslab, bslab, wtail, btail


def critic_forward_ref(state, action, params):
    """Pure-JAX reference of the PyTorch forward."""
    (w1, b1, w2, b2, w3, b3, w4, b4, w5, b5, w6, b6) = params
    sa = jnp.concatenate([state, action], axis=1)
    q1 = jnp.maximum(sa @ w1 + b1, 0.0)
    q1 = jnp.maximum(q1 @ w2 + b2, 0.0)
    q1 = q1 @ w3 + b3
    q2 = jnp.maximum(sa @ w4 + b4, 0.0)
    q2 = jnp.maximum(q2 @ w5 + b5, 0.0)
    q2 = q2 @ w6 + b6
    return q1, q2


if __name__ == "__main__":
    # Small shapes consistent with the module: state_dim=12, action_dim=4,
    # hidden_dim=32, batch=8.
    state_dim, action_dim, hidden_dim, batch = 12, 4, 32, 8

    key = jax.random.PRNGKey(0)
    key, ks, ka, kp = jax.random.split(key, 4)
    state = jax.random.normal(ks, (batch, state_dim), jnp.float32)
    action = jax.random.normal(ka, (batch, action_dim), jnp.float32)
    params = init_critic_params(kp, state_dim, action_dim, hidden_dim)

    # One-time packing of the twin heads into fused VMEM slabs.
    packed = pack_critic_params(params, state_dim, action_dim, hidden_dim)

    # --- small-batch, single-tile path ---
    q1, q2 = critic_forward(state, action, packed)
    q1, q2 = jax.block_until_ready((q1, q2))
    q1_ref, q2_ref = critic_forward_ref(state, action, params)
    assert q1.shape == (batch, 1) and q2.shape == (batch, 1)
    assert jnp.allclose(q1, q1_ref, atol=1e-3, rtol=1e-3)
    assert jnp.allclose(q2, q2_ref, atol=1e-3, rtol=1e-3)

    # --- larger batch: exercises the multi-tile (grid >= 2, 128-aligned) path ---
    kb1, kb2 = jax.random.split(key)
    state_b = jax.random.normal(kb1, (1000, state_dim), jnp.float32)
    action_b = jax.random.normal(kb2, (1000, action_dim), jnp.float32)
    q1b, q2b = critic_forward(state_b, action_b, packed, block_batch=1024)
    q1b, q2b = jax.block_until_ready((q1b, q2b))
    q1b_ref, q2b_ref = critic_forward_ref(state_b, action_b, params)
    assert q1b.shape == (1000, 1) and q2b.shape == (1000, 1)
    assert jnp.allclose(q1b, q1b_ref, atol=1e-3, rtol=1e-3)
    assert jnp.allclose(q2b, q2b_ref, atol=1e-3, rtol=1e-3)

    # --- opt-in bf16 operand path (halves the HBM input stream at training B) ---
    q1h, q2h = critic_forward(state, action, packed, compute_dtype=jnp.bfloat16)
    q1h, q2h = jax.block_until_ready((q1h, q2h))
    assert q1h.shape == (batch, 1) and q2h.shape == (batch, 1)
    assert bool(jnp.all(jnp.isfinite(q1h))) and bool(jnp.all(jnp.isfinite(q2h)))

    print("KERNEL_OK")
</pallas_src>

<mosaic_0001>
module attributes {stable_mosaic.version = 11 : i64} {
  func.func @_critic_kernel(%arg0: i32, %arg1: memref<8x16xf32, #tpu.memory_space<vmem>>, %arg2: memref<80x64xf32, #tpu.memory_space<vmem>>, %arg3: memref<2x64xf32, #tpu.memory_space<vmem>>, %arg4: memref<2x64xf32, #tpu.memory_space<vmem>>, %arg5: memref<2x1xf32, #tpu.memory_space<vmem>>, %arg6: memref<2x8xf32, #tpu.memory_space<vmem>>) attributes {dimension_semantics = [#tpu.dimension_semantics<parallel>], iteration_bounds = array<i64: 1>, scalar_prefetch = 0 : i64, scratch_operands = 0 : i64, tpu.core_type = #tpu.core_type<tc>, window_params = [{transform_indices = @transform_0, window_bounds = array<i64: 8, 16>}, {pipeline_mode = #tpu.pipeline_mode<synchronous>, transform_indices = @transform_1, window_bounds = array<i64: 80, 64>}, {pipeline_mode = #tpu.pipeline_mode<synchronous>, transform_indices = @transform_2, window_bounds = array<i64: 2, 64>}, {pipeline_mode = #tpu.pipeline_mode<synchronous>, transform_indices = @transform_3, window_bounds = array<i64: 2, 64>}, {pipeline_mode = #tpu.pipeline_mode<synchronous>, transform_indices = @transform_4, window_bounds = array<i64: 2, 1>}, {transform_indices = @transform_5, window_bounds = array<i64: 2, 8>}]} {
    %c0 = arith.constant 0 : index
    %c0_0 = arith.constant 0 : index
    %0 = vector.load %arg1[%c0, %c0_0] : memref<8x16xf32, #tpu.memory_space<vmem>>, vector<8x16xf32>
    %c0_1 = arith.constant 0 : index
    %c0_2 = arith.constant 0 : index
    %1 = vector.load %arg2[%c0_1, %c0_2] : memref<80x64xf32, #tpu.memory_space<vmem>>, vector<16x64xf32>
    %cst = arith.constant dense<0.000000e+00> : vector<8x64xf32>
    %2 = tpu.matmul %0, %1, %cst {dimension_numbers = #tpu.dot_dimension_numbers<[1], [0], [0], [1], [0, 0, 1, 1], [], []>} : vector<8x16xf32>, vector<16x64xf32>, vector<8x64xf32> -> vector<8x64xf32>
    %c0_3 = arith.constant 0 : index
    %c0_4 = arith.constant 0 : index
    %3 = vector.load %arg3[%c0_3, %c0_4] : memref<2x64xf32, #tpu.memory_space<vmem>>, vector<1x64xf32>
    %4 = vector.broadcast %3 : vector<1x64xf32> to vector<8x64xf32>
    %5 = arith.addf %2, %4 : vector<8x64xf32>
    %cst_5 = arith.constant 0.000000e+00 : f32
    %6 = vector.broadcast %cst_5 : f32 to vector<8x64xf32>
    %7 = arith.maximumf %5, %6 : vector<8x64xf32>
    %c16 = arith.constant 16 : index
    %c0_6 = arith.constant 0 : index
    %8 = vector.load %arg2[%c16, %c0_6] : memref<80x64xf32, #tpu.memory_space<vmem>>, vector<64x64xf32>
    %cst_7 = arith.constant dense<0.000000e+00> : vector<8x64xf32>
    %9 = tpu.matmul %7, %8, %cst_7 {dimension_numbers = #tpu.dot_dimension_numbers<[1], [0], [0], [1], [0, 0, 1, 1], [], []>} : vector<8x64xf32>, vector<64x64xf32>, vector<8x64xf32> -> vector<8x64xf32>
    %c1 = arith.constant 1 : index
    %c0_8 = arith.constant 0 : index
    %10 = vector.load %arg3[%c1, %c0_8] : memref<2x64xf32, #tpu.memory_space<vmem>>, vector<1x64xf32>
    %11 = vector.broadcast %10 : vector<1x64xf32> to vector<8x64xf32>
    %12 = arith.addf %9, %11 : vector<8x64xf32>
    %cst_9 = arith.constant 0.000000e+00 : f32
    %13 = vector.broadcast %cst_9 : f32 to vector<8x64xf32>
    %14 = arith.maximumf %12, %13 : vector<8x64xf32>
    %c0_10 = arith.constant 0 : index
    %c0_11 = arith.constant 0 : index
    %15 = vector.load %arg4[%c0_10, %c0_11] : memref<2x64xf32, #tpu.memory_space<vmem>>, vector<2x64xf32>
    %cst_12 = arith.constant dense<0.000000e+00> : vector<2x8xf32>
    %16 = tpu.matmul %15, %14, %cst_12 {dimension_numbers = #tpu.dot_dimension_numbers<[1], [1], [0], [0], [0, 0, 1, 0], [], []>} : vector<2x64xf32>, vector<8x64xf32>, vector<2x8xf32> -> vector<2x8xf32>
    %c0_13 = arith.constant 0 : index
    %c0_14 = arith.constant 0 : index
    %17 = vector.load %arg5[%c0_13, %c0_14] : memref<2x1xf32, #tpu.memory_space<vmem>>, vector<2x1xf32>
    %18 = vector.broadcast %17 : vector<2x1xf32> to vector<2x8xf32>
    %19 = arith.addf %16, %18 : vector<2x8xf32>
    %c0_15 = arith.constant 0 : index
    %c0_16 = arith.constant 0 : index
    %20 = vector.load %arg6[%c0_15, %c0_16] : memref<2x8xf32, #tpu.memory_space<vmem>>, vector<2x8xf32>
    tpu.vector_store %arg6[%c0_15, %c0_16], %19 {strides = array<i32>} : memref<2x8xf32, #tpu.memory_space<vmem>>, vector<2x8xf32>,
    return
  }
  func.func @transform_0(%arg0: i32) -> (i32, i32) {
    %c0_i32 = arith.constant 0 : i32
    %c0_i32_0 = arith.constant 0 : i32
    return %arg0, %c0_i32 : i32, i32
  }
  func.func @transform_1(%arg0: i32) -> (i32, i32) {
    %c0_i32 = arith.constant 0 : i32
    %c0_i32_0 = arith.constant 0 : i32
    %c0_i32_1 = arith.constant 0 : i32
    return %c0_i32, %c0_i32_0 : i32, i32
  }
  func.func @transform_2(%arg0: i32) -> (i32, i32) {
    %c0_i32 = arith.constant 0 : i32
    %c0_i32_0 = arith.constant 0 : i32
    %c0_i32_1 = arith.constant 0 : i32
    return %c0_i32, %c0_i32_0 : i32, i32
  }
  func.func @transform_3(%arg0: i32) -> (i32, i32) {
    %c0_i32 = arith.constant 0 : i32
    %c0_i32_0 = arith.constant 0 : i32
    %c0_i32_1 = arith.constant 0 : i32
    return %c0_i32, %c0_i32_0 : i32, i32
  }
  func.func @transform_4(%arg0: i32) -> (i32, i32) {
    %c0_i32 = arith.constant 0 : i32
    %c0_i32_0 = arith.constant 0 : i32
    %c0_i32_1 = arith.constant 0 : i32
    return %c0_i32, %c0_i32_0 : i32, i32
  }
  func.func @transform_5(%arg0: i32) -> (i32, i32) {
    %c0_i32 = arith.constant 0 : i32
    %c0_i32_0 = arith.constant 0 : i32
    return %c0_i32, %arg0 : i32, i32
  }
}

</mosaic_0001>

<bundles_post_ra>
// kernel: tpu_custom_call.1
= control target key start
LH: loop header
LB: loop body
LE: loop exit
PB: predicated region body
PF: predicated region fallthrough
CT: control target
= control target key end

     0   :  { %vm26_vm0 = vcmask 130048   ;;  %s252_s0 = inlined_call_operand.vmem [shape: f32[8,16], index: 0, kind: input, shape index: {}]   ;;  %s253_s1 = inlined_call_operand.vmem [shape: f32[80,64], index: 1, kind: input, shape index: {}]   ;;  %s254_s2 = inlined_call_operand.vmem [shape: f32[2,64], index: 2, kind: input, shape index: {}]   ;;  %s255_s3 = inlined_call_operand.vmem [shape: f32[2,64], index: 3, kind: input, shape index: {}]   ;;  %s256_s4 = inlined_call_operand.vmem [shape: f32[2,1], index: 4, kind: input, shape index: {}]   ;;  %s257_s5 = inlined_call_operand.hbm [shape: f32[2,8], index: 5, kind: output, shape index: {}]  }
   0x1   :  { %v23_v0 = vld [vmem:[%s253_s1 + $0x8] sm:$0xff]  ;;  %v22_v1 = vld [vmem:[%s253_s1] sm:$0xff]  ;;  %v56_v5 = vld [vmem:[%s253_s1 + $0x38] sm:$0xff] }
   0x2   :  { %44 = vmatpush.msra.mxu0 %v23_v0  ;;  %v21_v2 = vld [vmem:[%s252_s0] sm:$0xff]  ;;  %v58_v3 = vld [vmem:[%s253_s1 + $0x48] sm:$0xff] }
   0x3   :  { %v57_v4 = vld [vmem:[%s253_s1 + $0x40] sm:$0xff]  ;;  %73 = vmatpush.msra.mxu1 %v58_v3 }
   0x4   :  { %45 = vmatpush.msra.mxu0 %v22_v1 }
   0x5   :  { %10 = vsyncpa [#allocation3], 0  ;;  %137 = vmatmul.msk.f32.vlgmr.msra.gmra.mxu0 %vm26_vm0, %v21_v2  ;;  %74 = vmatpush.msra.mxu1 %v57_v4  ;;  %v55_v6 = vld [vmem:[%s253_s1 + $0x30] sm:$0xff]  ;;  %v54_v7 = vld [vmem:[%s253_s1 + $0x28] sm:$0xff]  ;;  %vm61_vm1 = vcmask 523264   ;;  %v172_v16 = vmov 0  }
   0x6   :  { %v53_v8 = vld [vmem:[%s253_s1 + $0x20] sm:$0xff]  ;;  %v52_v9 = vld [vmem:[%s253_s1 + $0x18] sm:$0xff]  ;;  %v51_v10 = vld [vmem:[%s253_s1 + $0x10] sm:$0xff]  ;;  %143 = vset.pattern.permute.xlu0 %v172_v16  ;;  %s173_s21 = smov [#allocation2]   ;;  %s128_s24 = sshll.u32 %s257_s5, 4  ;;  %vm119_vm2 = vcmask 58368   ;;  %s129_s24 = int_to_ptr.hbm [resolvable:$true] %s128_s24 }
   0x7   :  { %75 = vmatpush.msra.mxu1 %v56_v5  ;;  %v144_v11 = vld [vmem:[%s254_s2] ss:$0 sm:$0xff]  ;;  %v145_v17 = vld [vmem:[%s254_s2 + $0x1] ss:$0 sm:$0xff]  ;;  %s126_s22 = sshll.u32 %s173_s21, 4  ;;  %s127_s22 = int_to_ptr.vmem [resolvable:$true] %s126_s22 }
   0x8   :  { %v87_v15 = vld [vmem:[%s256_s4] sm:$0x3] }
   0x9   :  { %76 = vmatpush.msra.mxu1 %v55_v6  ;;  %90 = vperm.xlu0 %143, %v87_v15   ;;  %v86_v21 = vld [vmem:[%s255_s3] sm:$0x3] }
   0xb   :  { %77 = vmatpush.msra.mxu1 %v54_v7 }
   0xd   :  { %78 = vmatpush.msra.mxu1 %v53_v8 }
   0xf   :  { %79 = vmatpush.msra.mxu1 %v52_v9 }
  0x11   :  { %80 = vmatpush.msra.mxu1 %v51_v10 }
  0x7b   :  { %v91_v22 = vpop.permute.xlu0 %90 }
  0x82   :  { %v47_v12 = vpop.f32.mrf.mxu0 }
  0x83   :  { %v48_v13 = vadd.f32 %v144_v11, %v47_v12 }
  0x85   :  { %v50_v14 = vmax.f32 %v48_v13, 0.0 }
  0x87   :  { %138 = vmatmul.msk.f32.vlgmr.msra.gmra.mxu1 %vm61_vm1, %v50_v14 }
 0x104   :  { %v82_v18 = vpop.f32.mrf.mxu1 }
 0x105   :  { %v83_v19 = vadd.f32 %v145_v17, %v82_v18 }
 0x107   :  { %v85_v20 = vmax.f32 %v83_v19, 0.0 }
 0x109   :  { %139 = vmatpush.xpose.msk.msra.mxu2 %vm61_vm1, %v85_v20 }
 0x10c   :  { %140 = vmatmul.msk.f32.vlgmr.msra.gmra.mxu2 %vm61_vm1, %v86_v21 }
 0x18f   :  { %v116_v23 = vpop.f32.mrf.mxu2 }
 0x190   :  { %v117_v24 = vadd.f32 %v116_v23, %v91_v22 }
 0x192   :  { %120 = vst.msk [vmem:[#allocation2] sm:$0x3] %vm119_vm2, %v117_v24 }
 0x193   :  { %131 = dma.vmem_to_hbm [thread:$0]  %s127_s22, 32, %s129_s24, [#allocation3]  }
 0x194   :  { %170 = dma.done.wait [#allocation3], 32  }
 0x195   :  { %171 = vsyncadd [#allocation3], 4294967264 }
 0x196   :  { %136 = vsyncpa [#allocation3], 1 }

</bundles_post_ra>
